<compile_context>
chip_gen: v6e
topology: v6e:2x2x1
jax: 0.10.0
libtpu: 0.0.40
codegen_flags: <defaults>
</compile_context>

<pallas_src>
import functools

import jax
import jax.numpy as jnp
from jax.experimental import pallas as pl
from jax.experimental.pallas import tpu as pltpu

KERNEL_SIZE = 5
CHAR_EMBED = 50


def _round_up(x, m):
    return ((x + m - 1) // m) * m


def char_cnn_embed_kernel(ids_ref, table_ref, wconv_ref, bconv_ref,
                          whw_ref, bhw_ref, out_ref):
    """Fused gather + CharCNN + Highway for one tile of TN words.

    ids_ref   : (TN, L)           int32   char indices for TN words
    table_ref : (V_pad, C)        bf16    char embedding table (pad row zeroed)
    wconv_ref : (K*C, F_pad)      bf16    im2col-flattened Conv1d weight
    bconv_ref : (1, F_pad)        f32     Conv1d bias
    whw_ref   : (F_pad, 2*F_pad)  bf16    [proj | gate] fused highway weight
    bhw_ref   : (1, 2*F_pad)      f32     [proj | gate] fused highway bias
    out_ref   : (TN, F_pad)       f32
    """
    tn, L = ids_ref.shape
    v_pad, _ = table_ref.shape
    f_pad = out_ref.shape[-1]
    l_out = L - KERNEL_SIZE + 1
    cdt = table_ref.dtype                      # matmul compute dtype (bf16)

    # --- Char embedding lookup as an exact one-hot MXU matmul. ---
    ids = ids_ref[...]                                              # (TN, L)
    iota_v = jax.lax.broadcasted_iota(jnp.int32, (tn, L, v_pad), 2)
    onehot = (ids[:, :, None] == iota_v).astype(cdt)                # (TN, L, V_pad)
    emb = jnp.einsum('nlv,vc->nlc', onehot, table_ref[...],
                     preferred_element_type=jnp.float32).astype(cdt)  # (TN, L, C)

    # --- Conv1d as a single im2col matmul (K*C-wide contraction). ---
    unfolded = jnp.concatenate(
        [emb[:, k:k + l_out, :] for k in range(KERNEL_SIZE)], axis=2)  # (TN,l_out,K*C)
    acc = jnp.einsum('nlx,xf->nlf', unfolded, wconv_ref[...],
                     preferred_element_type=jnp.float32)               # (TN,l_out,F_pad)

    # Bias add + ReLU hoisted past the max-pool: max(relu(a_l + b)) over l
    # == relu(max(a_l) + b) since +b is constant in l and relu is monotone.
    x_conv = jnp.maximum(jnp.max(acc, axis=1) + bconv_ref[...], 0.0)   # (TN, F_pad)

    # --- Highway: one fused (F_pad -> 2*F_pad) matmul, then split. ---
    hw = jnp.dot(x_conv.astype(cdt), whw_ref[...],
                 preferred_element_type=jnp.float32) + bhw_ref[...]    # (TN, 2*F_pad)
    proj = jnp.maximum(hw[:, :f_pad], 0.0)
    gate = jax.nn.sigmoid(hw[:, f_pad:])
    x_highway = gate * proj + (1.0 - gate) * x_conv

    # Dropout(0.3) is identity in eval mode.
    # TODO(synk): training-mode dropout would use pltpu.prng_seed /
    # pltpu.prng_random_bits; omitted to match deterministic eval semantics.
    out_ref[...] = x_highway.astype(out_ref.dtype)


@functools.partial(jax.jit,
                   static_argnames=("embed_size", "block_n", "matmul_dtype"))
def model_embeddings_forward(input_ids, char_table,
                             conv_w, conv_b, proj_w, proj_b, gate_w, gate_b,
                             *, embed_size, block_n=256,
                             matmul_dtype=jnp.bfloat16):
    """Padding / weight re-layout in plain JAX, then a single Pallas call."""
    S, B, L = input_ids.shape
    V, C = char_table.shape
    K = KERNEL_SIZE
    F = embed_size
    N = S * B
    l_out = L - K + 1

    # Padded sizes: lane-dense feature/vocab dims, sublane-aligned word tile.
    f_pad = _round_up(F, 128)
    v_pad = _round_up(V, 128)
    tn = min(_round_up(N, 8), _round_up(block_n, 8))
    n_pad = _round_up(N, tn)
    grid = (n_pad // tn,)

    # Per-word HBM input: only the int32 char ids.
    ids = input_ids.reshape(N, L).astype(jnp.int32)
    if n_pad != N:
        ids = jnp.pad(ids, ((0, n_pad - N), (0, 0)))

    # Parameter re-layout / padding / cast, done once outside the kernel.
    table = jnp.zeros((v_pad, C), matmul_dtype).at[:V].set(
        char_table.astype(matmul_dtype))
    wconv = jnp.transpose(conv_w, (2, 1, 0)).reshape(K * C, F)     # (K*C, F)
    wconv = jnp.zeros((K * C, f_pad), matmul_dtype).at[:, :F].set(
        wconv.astype(matmul_dtype))
    bconv = jnp.zeros((1, f_pad), jnp.float32).at[0, :F].set(
        conv_b.astype(jnp.float32))
    whw = jnp.zeros((f_pad, 2 * f_pad), matmul_dtype)
    whw = whw.at[:F, :F].set(proj_w.T.astype(matmul_dtype))
    whw = whw.at[:F, f_pad:f_pad + F].set(gate_w.T.astype(matmul_dtype))
    bhw = jnp.zeros((1, 2 * f_pad), jnp.float32)
    bhw = bhw.at[0, :F].set(proj_b.astype(jnp.float32))
    bhw = bhw.at[0, f_pad:f_pad + F].set(gate_b.astype(jnp.float32))

    itemsize = jnp.dtype(matmul_dtype).itemsize
    cost = pl.CostEstimate(
        flops=int(2 * n_pad * L * v_pad * C             # one-hot gather matmul
                  + 2 * n_pad * l_out * K * C * f_pad   # im2col conv matmul
                  + 2 * n_pad * f_pad * 2 * f_pad),     # fused highway matmul
        transcendentals=int(n_pad * f_pad),             # sigmoid
        bytes_accessed=int(ids.size * 4
                           + (table.size + wconv.size + whw.size) * itemsize
                           + (bconv.size + bhw.size) * 4
                           + n_pad * f_pad * 4))

    out = pl.pallas_call(
        char_cnn_embed_kernel,
        out_shape=jax.ShapeDtypeStruct((n_pad, f_pad), jnp.float32),
        grid_spec=pltpu.PrefetchScalarGridSpec(
            num_scalar_prefetch=0,
            grid=grid,
            in_specs=[
                pl.BlockSpec((tn, L), lambda i: (i, 0)),             # ids (tiled)
                pl.BlockSpec((v_pad, C), lambda i: (0, 0)),          # char table
                pl.BlockSpec((K * C, f_pad), lambda i: (0, 0)),      # conv weight
                pl.BlockSpec((1, f_pad), lambda i: (0, 0)),          # conv bias
                pl.BlockSpec((f_pad, 2 * f_pad), lambda i: (0, 0)),  # highway W
                pl.BlockSpec((1, 2 * f_pad), lambda i: (0, 0)),      # highway b
            ],
            out_specs=pl.BlockSpec((tn, f_pad), lambda i: (i, 0)),
        ),
        compiler_params=pltpu.CompilerParams(
            dimension_semantics=("parallel",),   # words shard across TCs on v7x
            vmem_limit_bytes=32 * 1024 * 1024,
        ),
        cost_estimate=cost,
    )(ids, table, wconv, bconv, whw, bhw)

    return out[:N, :F].reshape(S, B, F)


def reference_forward(input_ids, char_table,
                      conv_w, conv_b, proj_w, proj_b, gate_w, gate_b,
                      embed_size):
    """Pure-JAX f32 reference mirroring the PyTorch module (eval mode)."""
    S, B, L = input_ids.shape
    K = KERNEL_SIZE
    l_out = L - K + 1
    emb = jnp.take(char_table, input_ids, axis=0)              # (S, B, L, C)
    x = emb.reshape(S * B, L, CHAR_EMBED)                      # NLC layout
    wflat = jnp.transpose(conv_w, (2, 1, 0)).reshape(K * CHAR_EMBED, embed_size)
    unf = jnp.concatenate([x[:, k:k + l_out, :] for k in range(K)], axis=2)
    conv = jnp.einsum('nlx,xf->nlf', unf, wflat) + conv_b
    x_conv = jnp.max(jax.nn.relu(conv), axis=1)
    proj = jax.nn.relu(x_conv @ proj_w.T + proj_b)
    gate = jax.nn.sigmoid(x_conv @ gate_w.T + gate_b)
    hw = gate * proj + (1.0 - gate) * x_conv
    return hw.reshape(S, B, embed_size)


if __name__ == "__main__":
    # Small shapes consistent with the module.
    SEQ_LEN = 8          # sentence_length
    BATCH = 2            # batch_size
    MAX_WORD_LEN = 12    # max_word_length (>= kernel_size)
    EMBED_SIZE = 32      # embed_size
    CHAR_VOCAB = 30      # len(vocab.char2id)
    PAD_IDX = 0          # vocab.char2id['<pad>']

    key = jax.random.PRNGKey(0)
    k_ids, k_tab, k_cw, k_cb, k_pw, k_pb, k_gw, k_gb = jax.random.split(key, 8)

    input_ids = jax.random.randint(
        k_ids, (SEQ_LEN, BATCH, MAX_WORD_LEN), 0, CHAR_VOCAB, dtype=jnp.int32)

    char_table = 0.1 * jax.random.normal(
        k_tab, (CHAR_VOCAB, CHAR_EMBED), dtype=jnp.float32)
    char_table = char_table.at[PAD_IDX].set(0.0)   # padding_idx row == 0

    conv_w = 0.1 * jax.random.normal(
        k_cw, (EMBED_SIZE, CHAR_EMBED, KERNEL_SIZE), dtype=jnp.float32)
    conv_b = 0.1 * jax.random.normal(k_cb, (EMBED_SIZE,), dtype=jnp.float32)
    proj_w = 0.1 * jax.random.normal(
        k_pw, (EMBED_SIZE, EMBED_SIZE), dtype=jnp.float32)
    proj_b = 0.1 * jax.random.normal(k_pb, (EMBED_SIZE,), dtype=jnp.float32)
    gate_w = 0.1 * jax.random.normal(
        k_gw, (EMBED_SIZE, EMBED_SIZE), dtype=jnp.float32)
    gate_b = 0.1 * jax.random.normal(k_gb, (EMBED_SIZE,), dtype=jnp.float32)

    # block_n=8 -> a 2-step grid even at these tiny shapes, exercising the
    # tiled / double-buffered path.
    out = model_embeddings_forward(
        input_ids, char_table, conv_w, conv_b, proj_w, proj_b, gate_w, gate_b,
        embed_size=EMBED_SIZE, block_n=8)
    out = jax.block_until_ready(out)

    assert out.shape == (SEQ_LEN, BATCH, EMBED_SIZE), out.shape
    assert out.dtype == jnp.float32

    ref = reference_forward(input_ids, char_table, conv_w, conv_b,
                            proj_w, proj_b, gate_w, gate_b, EMBED_SIZE)
    max_err = float(jnp.max(jnp.abs(out - ref)))
    assert max_err < 5e-2, f"max abs error vs reference: {max_err}"

    print("KERNEL_OK")
</pallas_src>

<mosaic_0001>
module attributes {stable_mosaic.version = 11 : i64} {
  func.func @char_cnn_embed_kernel(%arg0: i32, %arg1: memref<8x12xi32, #tpu.memory_space<vmem>>, %arg2: memref<128x50xbf16, #tpu.memory_space<vmem>>, %arg3: memref<250x128xbf16, #tpu.memory_space<vmem>>, %arg4: memref<1x128xf32, #tpu.memory_space<vmem>>, %arg5: memref<128x256xbf16, #tpu.memory_space<vmem>>, %arg6: memref<1x256xf32, #tpu.memory_space<vmem>>, %arg7: memref<8x128xf32, #tpu.memory_space<vmem>>) attributes {dimension_semantics = [#tpu.dimension_semantics<parallel>], iteration_bounds = array<i64: 2>, scalar_prefetch = 0 : i64, scratch_operands = 0 : i64, tpu.core_type = #tpu.core_type<tc>, window_params = [{transform_indices = @transform_0, window_bounds = array<i64: 8, 12>}, {pipeline_mode = #tpu.pipeline_mode<synchronous>, transform_indices = @transform_1, window_bounds = array<i64: 128, 50>}, {pipeline_mode = #tpu.pipeline_mode<synchronous>, transform_indices = @transform_2, window_bounds = array<i64: 250, 128>}, {pipeline_mode = #tpu.pipeline_mode<synchronous>, transform_indices = @transform_3, window_bounds = array<i64: 1, 128>}, {pipeline_mode = #tpu.pipeline_mode<synchronous>, transform_indices = @transform_4, window_bounds = array<i64: 128, 256>}, {pipeline_mode = #tpu.pipeline_mode<synchronous>, transform_indices = @transform_5, window_bounds = array<i64: 1, 256>}, {transform_indices = @transform_6, window_bounds = array<i64: 8, 128>}]} {
    %c0 = arith.constant 0 : index
    %c0_0 = arith.constant 0 : index
    %0 = vector.load %arg1[%c0, %c0_0] : memref<8x12xi32, #tpu.memory_space<vmem>>, vector<8x12xi32>
    %1 = tpu.iota {dimensions = array<i32: 2>} : vector<8x12x128xi32>
    %2 = vector.shape_cast %0 : vector<8x12xi32> to vector<8x12x1xi32>
    %3 = vector.broadcast %2 : vector<8x12x1xi32> to vector<8x12x128xi32>
    %4 = arith.cmpi eq, %3, %1 : vector<8x12x128xi32>
    %5 = arith.extui %4 : vector<8x12x128xi1> to vector<8x12x128xi32>
    %6 = arith.sitofp %5 : vector<8x12x128xi32> to vector<8x12x128xf32>
    %7 = arith.truncf %6 : vector<8x12x128xf32> to vector<8x12x128xbf16>
    %c0_1 = arith.constant 0 : index
    %c0_2 = arith.constant 0 : index
    %8 = vector.load %arg2[%c0_1, %c0_2] : memref<128x50xbf16, #tpu.memory_space<vmem>>, vector<128x50xbf16>
    "tpu.trace_start"() <{level = 10 : i32, message = "nlv,vc->nlc"}> : () -> ()
    %cst = arith.constant dense<0.000000e+00> : vector<8x12x50xf32>
    %9 = tpu.matmul %7, %8, %cst {dimension_numbers = #tpu.dot_dimension_numbers<[2], [0], [0, 1], [1], [0, 0, 0, 1, 1, 1], [], []>} : vector<8x12x128xbf16>, vector<128x50xbf16>, vector<8x12x50xf32> -> vector<8x12x50xf32>
    "tpu.trace_stop"() : () -> ()
    %10 = arith.truncf %9 : vector<8x12x50xf32> to vector<8x12x50xbf16>
    %11 = vector.extract_strided_slice %10 {offsets = [0, 0, 0], sizes = [8, 8, 50], strides = [1, 1, 1]} : vector<8x12x50xbf16> to vector<8x8x50xbf16>
    %12 = vector.extract_strided_slice %10 {offsets = [0, 1, 0], sizes = [8, 8, 50], strides = [1, 1, 1]} : vector<8x12x50xbf16> to vector<8x8x50xbf16>
    %13 = vector.extract_strided_slice %10 {offsets = [0, 2, 0], sizes = [8, 8, 50], strides = [1, 1, 1]} : vector<8x12x50xbf16> to vector<8x8x50xbf16>
    %14 = vector.extract_strided_slice %10 {offsets = [0, 3, 0], sizes = [8, 8, 50], strides = [1, 1, 1]} : vector<8x12x50xbf16> to vector<8x8x50xbf16>
    %15 = vector.extract_strided_slice %10 {offsets = [0, 4, 0], sizes = [8, 8, 50], strides = [1, 1, 1]} : vector<8x12x50xbf16> to vector<8x8x50xbf16>
    %16 = tpu.concatenate %11, %12, %13, %14, %15 in 2 : vector<8x8x50xbf16>, vector<8x8x50xbf16>, vector<8x8x50xbf16>, vector<8x8x50xbf16>, vector<8x8x50xbf16> -> vector<8x8x250xbf16>
    %c0_3 = arith.constant 0 : index
    %c0_4 = arith.constant 0 : index
    %17 = vector.load %arg3[%c0_3, %c0_4] : memref<250x128xbf16, #tpu.memory_space<vmem>>, vector<250x128xbf16>
    "tpu.trace_start"() <{level = 10 : i32, message = "nlx,xf->nlf"}> : () -> ()
    %cst_5 = arith.constant dense<0.000000e+00> : vector<8x8x128xf32>
    %18 = tpu.matmul %16, %17, %cst_5 {dimension_numbers = #tpu.dot_dimension_numbers<[2], [0], [0, 1], [1], [0, 0, 0, 1, 1, 1], [], []>} : vector<8x8x250xbf16>, vector<250x128xbf16>, vector<8x8x128xf32> -> vector<8x8x128xf32>
    "tpu.trace_stop"() : () -> ()
    %cst_6 = arith.constant dense<0xFF800000> : vector<8x128xf32>
    %19 = vector.multi_reduction <maximumf>, %18, %cst_6 [1] : vector<8x8x128xf32> to vector<8x128xf32>
    %c0_7 = arith.constant 0 : index
    %c0_8 = arith.constant 0 : index
    %20 = vector.load %arg4[%c0_7, %c0_8] : memref<1x128xf32, #tpu.memory_space<vmem>>, vector<1x128xf32>
    %21 = vector.broadcast %20 : vector<1x128xf32> to vector<8x128xf32>
    %22 = arith.addf %19, %21 : vector<8x128xf32>
    %cst_9 = arith.constant 0.000000e+00 : f32
    %23 = vector.broadcast %cst_9 : f32 to vector<8x128xf32>
    %24 = arith.maximumf %22, %23 : vector<8x128xf32>
    %25 = arith.truncf %24 : vector<8x128xf32> to vector<8x128xbf16>
    %c0_10 = arith.constant 0 : index
    %c0_11 = arith.constant 0 : index
    %26 = vector.load %arg5[%c0_10, %c0_11] : memref<128x256xbf16, #tpu.memory_space<vmem>>, vector<128x256xbf16>
    %cst_12 = arith.constant dense<0.000000e+00> : vector<8x256xf32>
    %27 = tpu.matmul %25, %26, %cst_12 {dimension_numbers = #tpu.dot_dimension_numbers<[1], [0], [0], [1], [0, 0, 1, 1], [], []>} : vector<8x128xbf16>, vector<128x256xbf16>, vector<8x256xf32> -> vector<8x256xf32>
    %c0_13 = arith.constant 0 : index
    %c0_14 = arith.constant 0 : index
    %28 = vector.load %arg6[%c0_13, %c0_14] : memref<1x256xf32, #tpu.memory_space<vmem>>, vector<1x256xf32>
    %29 = vector.broadcast %28 : vector<1x256xf32> to vector<8x256xf32>
    %30 = arith.addf %27, %29 : vector<8x256xf32>
    %31 = vector.extract_strided_slice %30 {offsets = [0, 0], sizes = [8, 128], strides = [1, 1]} : vector<8x256xf32> to vector<8x128xf32>
    %cst_15 = arith.constant 0.000000e+00 : f32
    %32 = vector.broadcast %cst_15 : f32 to vector<8x128xf32>
    %33 = arith.maximumf %31, %32 : vector<8x128xf32>
    %34 = vector.extract_strided_slice %30 {offsets = [0, 128], sizes = [8, 128], strides = [1, 1]} : vector<8x256xf32> to vector<8x128xf32>
    %35 = arith.negf %34 : vector<8x128xf32>
    %36 = math.exp %35 : vector<8x128xf32>
    %cst_16 = arith.constant 1.000000e+00 : f32
    %37 = vector.broadcast %cst_16 : f32 to vector<8x128xf32>
    %38 = arith.addf %37, %36 : vector<8x128xf32>
    %39 = arith.divf %37, %38 : vector<8x128xf32>
    %40 = arith.mulf %39, %33 : vector<8x128xf32>
    %cst_17 = arith.constant 1.000000e+00 : f32
    %41 = vector.broadcast %cst_17 : f32 to vector<8x128xf32>
    %42 = arith.subf %41, %39 : vector<8x128xf32>
    %43 = arith.mulf %42, %24 : vector<8x128xf32>
    %44 = arith.addf %40, %43 : vector<8x128xf32>
    %c0_18 = arith.constant 0 : index
    %c0_19 = arith.constant 0 : index
    %45 = vector.load %arg7[%c0_18, %c0_19] : memref<8x128xf32, #tpu.memory_space<vmem>>, vector<8x128xf32>
    tpu.vector_store %arg7[%c0_18, %c0_19], %44 {strides = array<i32>} : memref<8x128xf32, #tpu.memory_space<vmem>>, vector<8x128xf32>,
    return
  }
  func.func @transform_0(%arg0: i32) -> (i32, i32) {
    %c0_i32 = arith.constant 0 : i32
    %c0_i32_0 = arith.constant 0 : i32
    return %arg0, %c0_i32 : i32, i32
  }
  func.func @transform_1(%arg0: i32) -> (i32, i32) {
    %c0_i32 = arith.constant 0 : i32
    %c0_i32_0 = arith.constant 0 : i32
    %c0_i32_1 = arith.constant 0 : i32
    return %c0_i32, %c0_i32_0 : i32, i32
  }
  func.func @transform_2(%arg0: i32) -> (i32, i32) {
    %c0_i32 = arith.constant 0 : i32
    %c0_i32_0 = arith.constant 0 : i32
    %c0_i32_1 = arith.constant 0 : i32
    return %c0_i32, %c0_i32_0 : i32, i32
  }
  func.func @transform_3(%arg0: i32) -> (i32, i32) {
    %c0_i32 = arith.constant 0 : i32
    %c0_i32_0 = arith.constant 0 : i32
    %c0_i32_1 = arith.constant 0 : i32
    return %c0_i32, %c0_i32_0 : i32, i32
  }
  func.func @transform_4(%arg0: i32) -> (i32, i32) {
    %c0_i32 = arith.constant 0 : i32
    %c0_i32_0 = arith.constant 0 : i32
    %c0_i32_1 = arith.constant 0 : i32
    return %c0_i32, %c0_i32_0 : i32, i32
  }
  func.func @transform_5(%arg0: i32) -> (i32, i32) {
    %c0_i32 = arith.constant 0 : i32
    %c0_i32_0 = arith.constant 0 : i32
    %c0_i32_1 = arith.constant 0 : i32
    return %c0_i32, %c0_i32_0 : i32, i32
  }
  func.func @transform_6(%arg0: i32) -> (i32, i32) {
    %c0_i32 = arith.constant 0 : i32
    %c0_i32_0 = arith.constant 0 : i32
    return %arg0, %c0_i32 : i32, i32
  }
}

</mosaic_0001>

<bundles_post_ra>
// kernel: model_embeddings_forward.1
= control target key start
LH: loop header
LB: loop body
LE: loop exit
PB: predicated region body
PF: predicated region fallthrough
CT: control target
= control target key end

     0   :  { %11 = vsyncpa [#allocation3], 0  ;;  %s2528_s0 = inlined_call_operand.vmem [shape: s32[16,12], index: 0, kind: input, shape index: {}]   ;;  %s2529_s1 = inlined_call_operand.vmem [shape: bf16[128,50], index: 1, kind: input, shape index: {}]   ;;  %s2530_s2 = inlined_call_operand.vmem [shape: bf16[250,128], index: 2, kind: input, shape index: {}]   ;;  %s2531_s3 = inlined_call_operand.vmem [shape: f32[1,128], index: 3, kind: input, shape index: {}]   ;;  %s2532_s4 = inlined_call_operand.vmem [shape: bf16[128,256], index: 4, kind: input, shape index: {}]   ;;  %s2533_s5 = inlined_call_operand.vmem [shape: f32[1,256], index: 5, kind: input, shape index: {}]   ;;  %s2534_s6 = inlined_call_operand.hbm [shape: f32[16,128], index: 6, kind: output, shape index: {}]  }
   0x1   :  { %13 = vsyncpa [#allocation3 + $0x1], 0  ;;  %s2074_s21 = smov 0   ;;  %s2076_s22 = smov 0  }
   0x2   :  { %s2078_s23 = smov 0   ;;  %s2080_s24 = smov 0  }
   0x3 LB: > { %s2095_s25 = sadd.s32 4294967295, %s2029_s24   ;;  %s1700_s26 = sadd.s32 4294967294, %s2029_s24   ;;  %s2029_s24 = sphi %s2080_s24, %s2540_s24   ;;  %s2025_s23 = sphi %s2078_s23, %s2539_s23   ;;  %s2021_s22 = sphi %s2076_s22, %s2538_s22   ;;  %s2017_s21 = sphi %s2074_s21, %s2537_s21  }
   0x4   : > { %s2099_s27 = sadd.s32 1, %s2029_s24   ;;  %s157_s28 = sadd.s32 1, %s2025_s23 }
   0x5   : > { %s154_s29 = ssub.s32 %s2029_s24, %s2099_s27  ;;  %p167_p0 = scmp.ne.s32.totalorder %s2025_s23, %s2021_s22 }
   0x6   : > { %p155_p1 = scmp.eq.s32.totalorder %s154_s29, 0  ;;  %p168_p2 = scmp.eq.s32.totalorder %s2095_s25, 1 }
   0x7   : > { %p173_p3 = scmp.ne.s32.totalorder %s2021_s22, %s2017_s21  ;;  %p174_p4 = scmp.eq.s32.totalorder %s1700_s26, 1 }
   0x8   : > { %s2110_s30 = scalar_select %p155_p1, %s2025_s23, %s157_s28  }
   0x9   : > { %p2112_p5 = por %p168_p2, %p167_p0  ;;  %p2116_p6 = por %p174_p4, %p173_p3 }
   0xa   : > { %p1703_p7 = scmp.ge.s32.totalorder %s2029_s24, 1  ;;  %p214_p8 = scmp.lt.s32.totalorder %s2029_s24, 3 }
   0xc   : > { %p215_p9 = pnand %p1703_p7, %p214_p8 }
   0xd   : > { %p243_p10 = scmp.lt.s32.totalorder (!%p215_p9), %s2095_s25, 1  ;;  %s2033_s9 = smov (!%p215_p9), 100  }
   0xe   : > { %218 = sbr.rel (%p215_p9) target bundleno = 1025 (0x401), region = 44  ;;  %s2036_s20 = smov (!%p215_p9), 50  }
   0xf   : > { %s240_s12 = sand.u32 (!%p215_p9), 1, %s2021_s22   ;;  %s2038_s28 = smov (!%p215_p9), [#allocation2]  }
  0x10   : > { %s1704_s13 = sshll.u32 (!%p215_p9), %s240_s12, 3  ;;  %s1973_s29 = sshll.u32 (!%p215_p9), %s2038_s28, 4  ;;  %s1974_s29 = int_to_ptr.vmem [resolvable:$false] %s1973_s29 }
  0x11   : > { %s242_s15 = scalar_lea.vmem (!%p215_p9), [#allocation2], %s1704_s13 }
  0x12   : > { %s1641_s16 = sshll.u32 (!%p215_p9), %s242_s15, 4  ;;  %s1642_s16 = int_to_ptr.vmem [resolvable:$true] %s1641_s16 }
  0x13   : > { %v249_v0 = vlaneseq  ;;  %v1917_v1 = vld [vmem:[%s2529_s1 + $0x38] sm:$0xff]   ;;  %s244_s11 = scalar_select %p243_p10, %s2095_s25, 1  ;;  %v1918_v3 = vld [vmem:[%s2529_s1 + $0x30] sm:$0xff]   ;;  %v1919_v6 = vld [vmem:[%s2529_s1 + $0x28] sm:$0xff]   ;;  %v2031_v27 = vmov 1983009808  }
  0x14   : > { %1842 = vmatprep.subr.bf16.mxu0 %v1917_v1  ;;  %v1920_v12 = vld [vmem:[%s2529_s1 + $0x20] sm:$0xff]   ;;  %v1921_v14 = vld [vmem:[%s2529_s1 + $0x18] sm:$0xff]   ;;  %v1922_v17 = vld [vmem:[%s2529_s1 + $0x10] sm:$0xff]   ;;  %v421_v28 = vunpack.c.l.s4 %v2031_v27  ;;  %v2032_v36 = vmov 0.0   ;;  %s1969_s26 = scalar_lea.vmem %s1642_s16, 128  ;;  %p1976_p0 = scmp.lt.s32.totalorder %s1642_s16, %s1974_s29 }
  0x15   : > { %v2128_v2 = vshrl.u32 %v249_v0, 7  ;;  %1843 = vmatpush3.bf16.msra.mxu0 %v1917_v1  ;;  %s1705_s14 = sshll.u32 %s244_s11, 3  ;;  %v1923_v19 = vld [vmem:[%s2529_s1 + $0x8] sm:$0xff]   ;;  %v1924_v21 = vld [vmem:[%s2529_s1] sm:$0xff]   ;;  %v2167_v29 = vand.u32 127, %v249_v0  ;;  %p1970_p11 = scmp.ne.s32.totalorder %s1642_s16, %s1969_s26 }
  0x16   : > { %1844 = vmatprep.subr.bf16.mxu0 %v1918_v3  ;;  %s246_s19 = scalar_lea.vmem %s2528_s0, %s1705_s14  ;;  %v422_v32 = vunpack.c.0.s8 %v421_v28  ;;  %s2034_s14 = smov 72  }
  0x17   : > { %v264_v4 = vsub.s32 1, %v2128_v2  ;;  %v253_v5 = vsub.s32 0, %v2128_v2  ;;  %v248_v7 = vld [vmem:[%s246_s19] sm:$0xff]  ;;  %v275_v8 = vsub.s32 2, %v2128_v2  ;;  %v286_v11 = vsub.s32 3, %v2128_v2  ;;  %s2035_s19 = smov 22   ;;  %p1971_p12 = pnand %p1970_p11, %p2112_p5 }
  0x18   : > { %v297_v13 = vsub.s32 4, %v2128_v2  ;;  %v308_v16 = vsub.s32 5, %v2128_v2  ;;  %v319_v23 = vsub.s32 6, %v2128_v2  ;;  %v330_v25 = vsub.s32 7, %v2128_v2 }
  0x19   : > { %v265_v9 = vrot.slane %v248_v7, %v264_v4  ;;  %v254_v10 = vrot.slane %v248_v7, %v253_v5  ;;  %1845 = vmatpush3.bf16.msra.mxu0 %v1918_v3  ;;  %v276_v15 = vrot.slane %v248_v7, %v275_v8  ;;  %v287_v18 = vrot.slane %v248_v7, %v286_v11  ;;  %p1972_p13 = pneg %p1971_p12 }
  0x1a   : > { %1846 = vmatprep.subr.bf16.mxu0 %v1919_v6  ;;  %v298_v20 = vrot.slane %v248_v7, %v297_v13  ;;  %v309_v22 = vrot.slane %v248_v7, %v308_v16  ;;  %v320_v24 = vrot.slane %v248_v7, %v319_v23  ;;  %v331_v26 = vrot.slane %v248_v7, %v330_v25 }
  0x1b   : > { %267 = vbcast.lane.b32.xlu1 %v265_v9, 256  ;;  %256 = vbcast.lane.b32.xlu0 %v254_v10, 256  ;;  %v2172_v35 = vsub.s32 %v422_v32, %v2128_v2 }
  0x1d   : > { %1847 = vmatpush3.bf16.msra.mxu0 %v1919_v6 }
  0x1e   : > { %1848 = vmatprep.subr.bf16.mxu0 %v1920_v12 }
  0x1f   : > { %271 = vbcast.lane.b32.xlu1 %v265_v9, 264  ;;  %260 = vbcast.lane.b32.xlu0 %v254_v10, 264 }
  0x21   : > { %1849 = vmatpush3.bf16.msra.mxu0 %v1920_v12 }
  0x22   : > { %1850 = vmatprep.subr.bf16.mxu0 %v1921_v14 }
  0x23   : > { %282 = vbcast.lane.b32.xlu1 %v276_v15, 264  ;;  %278 = vbcast.lane.b32.xlu0 %v276_v15, 256 }
  0x25   : > { %1851 = vmatpush3.bf16.msra.mxu0 %v1921_v14 }
  0x26   : > { %1852 = vmatprep.subr.bf16.mxu0 %v1922_v17 }
  0x27   : > { %293 = vbcast.lane.b32.xlu1 %v287_v18, 264  ;;  %289 = vbcast.lane.b32.xlu0 %v287_v18, 256 }
  0x29   : > { %1853 = vmatpush3.bf16.msra.mxu0 %v1922_v17 }
  0x2a   : > { %1854 = vmatprep.subr.bf16.mxu0 %v1923_v19 }
  0x2b   : > { %304 = vbcast.lane.b32.xlu1 %v298_v20, 264  ;;  %300 = vbcast.lane.b32.xlu0 %v298_v20, 256 }
  0x2d   : > { %1855 = vmatpush3.bf16.msra.mxu0 %v1923_v19 }
  0x2e   : > { %1856 = vmatprep.subr.bf16.mxu0 %v1924_v21 }
  0x2f   : > { %315 = vbcast.lane.b32.xlu1 %v309_v22, 264  ;;  %311 = vbcast.lane.b32.xlu0 %v309_v22, 256 }
  0x31   : > { %1857 = vmatpush3.bf16.msra.mxu0 %v1924_v21 }
  0x33   : > { %326 = vbcast.lane.b32.xlu1 %v320_v24, 264  ;;  %322 = vbcast.lane.b32.xlu0 %v320_v24, 256 }
  0x37   : > { %337 = vbcast.lane.b32.xlu1 %v331_v26, 264  ;;  %333 = vbcast.lane.b32.xlu0 %v331_v26, 256 }
  0x8d   : > { %v268_v30 = vpop.permute.xlu1 %267  ;;  %v257_v31 = vpop.permute.xlu0 %256 }
  0x8e   : > { %vm341_vm0 = vcmp.eq.s32.totalorder %v268_v30, %v2167_v29  ;;  %vm339_vm1 = vcmp.eq.s32.totalorder %v257_v31, %v2167_v29 }
  0x8f   : > { %v1708_v37 = vsel %vm341_vm0, 1.0, %v2032_v36  ;;  %v1706_v38 = vsel %vm339_vm1, 1.0, %v2032_v36  ;;  %vm1256_vm0 = vcmask 1044480   ;;  %vm1038_vm1 = vcmask 179200  }
  0x91   : > { %v272_v33 = vpop.permute.xlu1 %271  ;;  %v261_v34 = vpop.permute.xlu0 %260 }
  0x92   : > { %vm342_vm2 = vcmp.eq.s32.totalorder %v272_v33, %v2167_v29  ;;  %vm340_vm3 = vcmp.eq.s32.totalorder %v261_v34, %v2167_v29 }
  0x93   : > { %v1709_v39 = vsel %vm342_vm2, 1.0, %v2032_v36  ;;  %v1707_v40 = vsel %vm340_vm3, 1.0, %v2032_v36  ;;  %vm1055_vm2 = vcmask 588800   ;;  %vm1004_vm3 = vcmask 408576  }
  0x94   : > { %v388_v41 = vpack.c.bf16 %v1709_v39, %v1708_v37  ;;  %v1723_v42 = vpack.c.bf16 %v1709_v39, %v1709_v39  ;;  %v387_v43 = vpack.c.bf16 %v1707_v40, %v1706_v38  ;;  %v1722_v44 = vpack.c.bf16 %v1707_v40, %v1707_v40 }
  0x95   : > { %v283_v45 = vpop.permute.xlu1 %282  ;;  %v279_v46 = vpop.permute.xlu0 %278 }
  0x96   : > { %v442_v47 = vrot.slane %v388_v41, %v2172_v35  ;;  %v449_v48 = vrot.slane %v1723_v42, %v2172_v35  ;;  %v426_v49 = vrot.slane %v387_v43, %v2172_v35  ;;  %v433_v50 = vrot.slane %v1722_v44, %v2172_v35 }
  0x97   : > { %vm344_vm4 = vcmp.eq.s32.totalorder %v283_v45, %v2167_v29  ;;  %vm343_vm5 = vcmp.eq.s32.totalorder %v279_v46, %v2167_v29 }
  0x98   : > { %v450_v51 = vcombine.high %v442_v47, %v442_v47  ;;  %v1711_v52 = vsel %vm344_vm4, 1.0, %v2032_v36  ;;  %v1710_v53 = vsel %vm343_vm5, 1.0, %v2032_v36  ;;  %v434_v54 = vcombine.high %v426_v49, %v426_v49 }
  0x99   : > { %v1724_v55 = vpack.c.bf16 %v1711_v52, %v1711_v52  ;;  %v389_v56 = vpack.c.bf16 %v1711_v52, %v1710_v53  ;;  %v294_v57 = vpop.permute.xlu1 %293  ;;  %v290_v58 = vpop.permute.xlu0 %289  ;;  %v548_v59 = vcombine.low %v433_v50, %v442_v47  ;;  %vm1243_vm4 = vcmask 998400  }
  0x9a   : > { %v564_v60 = vcombine.low %v450_v51, %v449_v48  ;;  %vm346_vm6 = vcmp.eq.s32.totalorder %v294_v57, %v2167_v29  ;;  %vm345_vm7 = vcmp.eq.s32.totalorder %v290_v58, %v2167_v29  ;;  %v547_v61 = vcombine.low %v426_v49, %v434_v54 }
  0x9b   : > { %v465_v62 = vrot.slane %v1724_v55, %v2172_v35  ;;  %v458_v63 = vrot.slane %v389_v56, %v2172_v35  ;;  %v1713_v0 = vsel %vm346_vm6, 1.0, %v2032_v36  ;;  %v1712_v1 = vsel %vm345_vm7, 1.0, %v2032_v36 }
  0x9c   : > { %v1725_v3 = vpack.c.bf16 %v1713_v0, %v1713_v0  ;;  %v390_v6 = vpack.c.bf16 %v1713_v0, %v1712_v1  ;;  %v555_v7 = vrot.slane %v547_v61, %v2172_v35  ;;  %v562_v8 = vrot.slane %v548_v59, %v2172_v35 }
  0x9d   : > { %v466_v9 = vcombine.high %v458_v63, %v458_v63  ;;  %v305_v10 = vpop.permute.xlu1 %304  ;;  %v301_v11 = vpop.permute.xlu0 %300  ;;  %v572_v12 = vrot.slane %v564_v60, %v2172_v35  ;;  %vm1021_vm5 = vcmask 818176   ;;  %vm1449_vm6 = vcmask 1041409  }
  0x9e   : > { %v481_v13 = vrot.slane %v1725_v3, %v2172_v35  ;;  %v474_v14 = vrot.slane %v390_v6, %v2172_v35  ;;  %vm348_vm8 = vcmp.eq.s32.totalorder %v305_v10, %v2167_v29  ;;  %vm347_vm9 = vcmp.eq.s32.totalorder %v301_v11, %v2167_v29 }
  0x9f   : > { %v565_v15 = vcombine.low %v458_v63, %v466_v9  ;;  %v1715_v16 = vsel %vm348_vm8, 1.0, %v2032_v36  ;;  %v1714_v17 = vsel %vm347_vm9, 1.0, %v2032_v36  ;;  %v563_v18 = vcombine.low %v555_v7, %v562_v8 }
  0xa0   : > { %v482_v19 = vcombine.high %v474_v14, %v474_v14  ;;  %v581_v20 = vcombine.low %v465_v62, %v474_v14  ;;  %v1726_v21 = vpack.c.bf16 %v1715_v16, %v1715_v16  ;;  %v391_v22 = vpack.c.bf16 %v1715_v16, %v1714_v17  ;;  %v1925_v14 = vld [vmem:[%s2530_s2 + $0x78] sm:$0x1f]   ;;  %v1927_v16 = vld [vmem:[%s2530_s2 + $0x70] sm:$0xff]   ;;  %v1929_v17 = vld [vmem:[%s2530_s2 + $0x68] sm:$0xff]  }
  0xa1   : > { %1858 = vmatprep.mubr.bf16.mxu0 %v563_v18  ;;  %v316_v23 = vpop.permute.xlu1 %315  ;;  %v312_v24 = vpop.permute.xlu0 %311  ;;  %v579_v25 = vrot.slane %v565_v15, %v2172_v35  ;;  %v1926_v15 = vld [vmem:[%s2530_s2 + $0x38] sm:$0xff]   ;;  %1870 = vmatprep.subr.msk.bf16.mxu1 %vm1256_vm0, %v1925_v14  ;;  %v1930_v18 = vld [vmem:[%s2530_s2 + $0x28] sm:$0xff]   ;;  %vm1452_vm7 = vcmask 1042434   ;;  %vm1455_vm8 = vcmask 1043459   ;;  %vm1458_vm9 = vcmask 1044484  }
  0xa2   : > { %v497_v26 = vrot.slane %v1726_v21, %v2172_v35  ;;  %v490_v27 = vrot.slane %v391_v22, %v2172_v35  ;;  %vm350_vm10 = vcmp.eq.s32.totalorder %v316_v23, %v2167_v29  ;;  %vm349_vm11 = vcmp.eq.s32.totalorder %v312_v24, %v2167_v29  ;;  %1803 = vmatpush3.bf16.msra.mxu1 %v1926_v15  ;;  %v1933_v22 = vld [vmem:[%s2530_s2 + $0x58] sm:$0xff]  }
  0xa3   : > { %v1717_v28 = vsel %vm350_vm10, 1.0, %v2032_v36  ;;  %v1716_v30 = vsel %vm349_vm11, 1.0, %v2032_v36  ;;  %v580_v31 = vcombine.low %v572_v12, %v579_v25  ;;  %v582_v32 = vcombine.low %v482_v19, %v481_v13  ;;  %1804 = vmatprep.subr.bf16.mxu1 %v1927_v16  ;;  %v1931_v19 = vld [vmem:[%s2530_s2 + $0x60] sm:$0xff]   ;;  %v1934_v23 = vld [vmem:[%s2530_s2 + $0x18] sm:$0xff]  }
  0xa4   : > { %v498_v33 = vcombine.high %v490_v27, %v490_v27  ;;  %v1727_v34 = vpack.c.bf16 %v1717_v28, %v1717_v28  ;;  %v392_v37 = vpack.c.bf16 %v1717_v28, %v1716_v30  ;;  %v589_v38 = vrot.slane %v581_v20, %v2172_v35  ;;  %v1932_v20 = vld [vmem:[%s2530_s2 + $0x20] sm:$0xff]   ;;  %v1935_v30 = vld [vmem:[%s2530_s2 + $0x50] sm:$0xff]  }
  0xa5   : > { %1859 = vmatmul.mubr.bf16.vlgmr.msra.gmra.mxu0 %v580_v31  ;;  %v327_v39 = vpop.permute.xlu1 %326  ;;  %v323_v40 = vpop.permute.xlu0 %322  ;;  %v596_v41 = vrot.slane %v582_v32, %v2172_v35  ;;  %v1936_v31 = vld [vmem:[%s2530_s2 + $0x10] sm:$0xff]   ;;  %vm1461_vm10 = vcmask 1045509   ;;  %vm1464_vm11 = vcmask 1046534  }
  0xa6   : > { %v598_v42 = vcombine.low %v490_v27, %v498_v33  ;;  %v513_v43 = vrot.slane %v1727_v34, %v2172_v35  ;;  %v506_v44 = vrot.slane %v392_v37, %v2172_v35  ;;  %vm352_vm12 = vcmp.eq.s32.totalorder %v327_v39, %v2167_v29 }
  0xa7   : > { %v1719_v45 = vsel %vm352_vm12, 1.0, %v2032_v36  ;;  %vm351_vm13 = vcmp.eq.s32.totalorder %v323_v40, %v2167_v29  ;;  %v597_v46 = vcombine.low %v589_v38, %v596_v41  ;;  %vm1467_vm12 = vcmask 1047559  }
  0xa8   : > { %v514_v47 = vcombine.high %v506_v44, %v506_v44  ;;  %v599_v48 = vcombine.low %v497_v26, %v506_v44  ;;  %v1728_v49 = vpack.c.bf16 %v1719_v45, %v1719_v45  ;;  %v1718_v50 = vsel %vm351_vm13, 1.0, %v2032_v36  ;;  %v1937_v44 = vld [vmem:[%s2530_s2 + $0x48] sm:$0xff]  }
  0xa9   : > { %v393_v51 = vpack.c.bf16 %v1719_v45, %v1718_v50  ;;  %1862 = vmatprep.mubr.bf16.mxu0 %v597_v46  ;;  %v338_v52 = vpop.permute.xlu1 %337  ;;  %v334_v53 = vpop.permute.xlu0 %333  ;;  %v606_v54 = vrot.slane %v598_v42, %v2172_v35  ;;  %v1938_v45 = vld [vmem:[%s2530_s2 + $0x8] sm:$0xff]  }
  0xaa   : > { %v529_v55 = vrot.slane %v1728_v49, %v2172_v35  ;;  %vm354_vm14 = vcmp.eq.s32.totalorder %v338_v52, %v2167_v29  ;;  %vm353_vm15 = vcmp.eq.s32.totalorder %v334_v53, %v2167_v29  ;;  %v613_v56 = vrot.slane %v599_v48, %v2172_v35 }
  0xab   : > { %v522_v57 = vrot.slane %v393_v51, %v2172_v35  ;;  %v1721_v58 = vsel %vm354_vm14, 1.0, %v2032_v36  ;;  %v1720_v59 = vsel %vm353_vm15, 1.0, %v2032_v36  ;;  %v615_v60 = vcombine.low %v514_v47, %v513_v43 }
  0xac   : > { %v1729_v61 = vpack.c.bf16 %v1721_v58, %v1721_v58  ;;  %v394_v62 = vpack.c.bf16 %v1721_v58, %v1720_v59  ;;  %v614_v63 = vcombine.low %v606_v54, %v613_v56  ;;  %v1939_v54 = vld [vmem:[%s2530_s2 + $0x40] sm:$0xff]  }
  0xad   : > { %v530_v0 = vcombine.high %v522_v57, %v522_v57  ;;  %v623_v1 = vrot.slane %v615_v60, %v2172_v35 }
  0xae   : > { %v545_v3 = vrot.slane %v1729_v61, %v2172_v35  ;;  %v538_v6 = vrot.slane %v394_v62, %v2172_v35  ;;  %1863 = vmatmul.mubr.bf16.gmra.mxu0 %v614_v63 }
  0xaf   : > { %v616_v29 = vcombine.low %v522_v57, %v530_v0 }
  0xb0   : > { %v546_v7 = vcombine.high %v538_v6, %v538_v6  ;;  %v632_v8 = vcombine.low %v529_v55, %v538_v6  ;;  %v1940_v55 = vld [vmem:[%s2530_s2] sm:$0xff]  }
  0xb1   : > { %v630_v9 = vrot.slane %v616_v29, %v2172_v35 }
  0xb2   : > { %v633_v10 = vcombine.low %v546_v7, %v545_v3  ;;  %v640_v36 = vrot.slane %v632_v8, %v2172_v35 }
  0xb3   : > { %v631_v11 = vcombine.low %v623_v1, %v630_v9 }
  0xb4   : > { %v647_v12 = vrot.slane %v633_v10, %v2172_v35  ;;  %v1928_v35 = vld [vmem:[%s2530_s2 + $0x30] sm:$0xff]  }
  0xb5   : > { %1866 = vmatprep.mubr.bf16.mxu0 %v631_v11  ;;  %1805 = vmatpush3.bf16.msra.mxu1 %v1928_v35 }
  0xb6   : > { %v648_v13 = vcombine.low %v640_v36, %v647_v12  ;;  %1806 = vmatprep.subr.bf16.mxu1 %v1929_v17 }
  0xb8   : > { %1867 = vmatmul.mubr.bf16.gmra.mxu0 %v648_v13 }
  0xb9   : > { %1807 = vmatpush3.bf16.msra.mxu1 %v1930_v18 }
  0xba   : > { %1808 = vmatprep.subr.bf16.mxu1 %v1931_v19 }
  0xbd   : > { %1809 = vmatpush3.bf16.msra.mxu1 %v1932_v20 }
  0xbe   : > { %1810 = vmatprep.subr.bf16.mxu1 %v1933_v22 }
  0xc1   : > { %1811 = vmatpush3.bf16.msra.mxu1 %v1934_v23 }
  0xc2   : > { %1812 = vmatprep.subr.bf16.mxu1 %v1935_v30 }
  0xc5   : > { %1813 = vmatpush3.bf16.msra.mxu1 %v1936_v31 }
  0xc6   : > { %1814 = vmatprep.subr.bf16.mxu1 %v1937_v44 }
  0xc9   : > { %1815 = vmatpush3.bf16.msra.mxu1 %v1938_v45 }
  0xca   : > { %1816 = vmatprep.subr.bf16.mxu1 %v1939_v54 }
  0xcd   : > { %1817 = vmatpush3.bf16.msra.mxu1 %v1940_v55 }
 0x165   : > { %v1860_v21 = vpop.f32.mrf.mxu0 }
 0x166   : > { %v798_v34 = vcombine.high %v1860_v21, %v1860_v21 }
 0x167   : > { %v737_v24 = vpop.f32.mrf.mxu0 }
 0x168   : > { %v796_v25 = vcombine.high %v737_v24, %v737_v24 }
 0x169   : > { %v1861_v26 = vpop.f32.mrf.mxu0 }
 0x16a   : > { %v812_v27 = vcombine.low %v737_v24, %v796_v25  ;;  %v799_v51 = vcombine.high %v1861_v26, %v1861_v26 }
 0x16b   : > { %v740_v28 = vpop.f32.mrf.mxu0 }
 0x16c   : > { %v797_v32 = vcombine.high %v740_v28, %v740_v28  ;;  %v2268_v33 = vpack.c.bf16 %v740_v28, %v812_v27  ;;  %v814_v62 = vcombine.low %v1861_v26, %v799_v51 }
 0x16e   : > { %v813_v37 = vcombine.low %v797_v32, %v1860_v21  ;;  %v1864_v38 = vpop.f32.mrf.mxu0  ;;  %v916_v39 = vrot.slane %v2268_v33, 1  ;;  %v837_v40 = vshrl.u32 %v2268_v33, 16  ;;  %v839_v41 = vshll.u32 %v2268_v33, 16 }
 0x16f   : > { %v980_v46 = vrot.slane %v2268_v33, 2  ;;  %v802_v0 = vcombine.high %v1864_v38, %v1864_v38 }
 0x170   : > { %v2273_v42 = vpack.c.bf16 %v798_v34, %v813_v37  ;;  %924 = vrot.lane.b32.xlu0 %v916_v39, %s2033_s9  ;;  %v753_v43 = vpop.f32.mrf.mxu0  ;;  %v940_v48 = vrot.slane %v837_v40, 1  ;;  %v941_v49 = vrot.slane %v839_v41, 2  ;;  %v841_v57 = vrot.slane %v839_v41, 1 }
 0x171   : > { %v800_v56 = vcombine.high %v753_v43, %v753_v43  ;;  %v2297_v1 = vpack.c.bf16 %v753_v43, %v814_v62  ;;  %v816_v9 = vcombine.low %v1864_v38, %v802_v0 }
 0x172   : > { %v917_v47 = vrot.slane %v2273_v42, 1  ;;  %v844_v50 = vshrl.u32 %v2273_v42, 16  ;;  %v1865_v52 = vpop.f32.mrf.mxu0  ;;  %v846_v53 = vshll.u32 %v2273_v42, 16  ;;  %v942_v58 = vor.u32 %v941_v49, %v940_v48 }
 0x173   : > { %v981_v59 = vrot.slane %v2273_v42, 2  ;;  %v842_v3 = vor.u32 %v841_v57, %v837_v40  ;;  %v918_v11 = vrot.slane %v2297_v1, 1  ;;  %v2306_v12 = vpack.c.bf16 %v1865_v52, %v816_v9 }
 0x174   : > { %988 = vrot.lane.b32.xlu0 %v980_v46, %s2034_s14  ;;  %926 = vrot.lane.b32.xlu1 %v917_v47, %s2033_s9  ;;  %v943_v60 = vrot.slane %v844_v50, 1  ;;  %v944_v61 = vrot.slane %v846_v53, 2  ;;  %v756_v63 = vpop.f32.mrf.mxu0  ;;  %v848_v8 = vrot.slane %v846_v53, 1  ;;  %v982_v14 = vrot.slane %v2297_v1, 2 }
 0x175   : > { %v801_v6 = vcombine.high %v756_v63, %v756_v63  ;;  %v815_v29 = vcombine.low %v800_v56, %v756_v63  ;;  %v851_v18 = vshrl.u32 %v2297_v1, 16  ;;  %v853_v19 = vshll.u32 %v2297_v1, 16 }
 0x176   : > { %v945_v7 = vor.u32 %v944_v61, %v943_v60  ;;  %v849_v36 = vor.u32 %v848_v8, %v844_v50  ;;  %v920_v20 = vrot.slane %v2306_v12, 1  ;;  %v803_v24 = vcombine.high %v1865_v52, %v1865_v52 }
 0x177   : > { %v2301_v10 = vpack.c.bf16 %v801_v6, %v815_v29  ;;  %v984_v26 = vrot.slane %v2306_v12, 2  ;;  %v946_v27 = vrot.slane %v851_v18, 1  ;;  %v947_v28 = vrot.slane %v853_v19, 2 }
 0x178   : > { %964 = vrot.lane.b32.xlu0 %v942_v58, %s2035_s19  ;;  %990 = vrot.lane.b32.xlu1 %v981_v59, %s2034_s14  ;;  %v1868_v13 = vpop.f32.mrf.mxu0  ;;  %v855_v38 = vrot.slane %v853_v19, 1  ;;  %v865_v39 = vshrl.u32 %v2306_v12, 16  ;;  %v867_v44 = vshll.u32 %v2306_v12, 16 }
 0x179   : > { %v919_v15 = vrot.slane %v2301_v10, 1  ;;  %v858_v16 = vshrl.u32 %v2301_v10, 16  ;;  %v860_v35 = vshll.u32 %v2301_v10, 16  ;;  %v983_v21 = vrot.slane %v2301_v10, 2 }
 0x17a   : > { %v769_v17 = vpop.f32.mrf.mxu0  ;;  %v948_v41 = vor.u32 %v947_v28, %v946_v27  ;;  %v806_v45 = vcombine.high %v1868_v13, %v1868_v13  ;;  %v856_v47 = vor.u32 %v855_v38, %v851_v18  ;;  %v952_v49 = vrot.slane %v865_v39, 1 }
 0x17b   : > { %v949_v22 = vrot.slane %v858_v16, 1  ;;  %v950_v23 = vrot.slane %v860_v35, 2  ;;  %v804_v30 = vcombine.high %v769_v17, %v769_v17  ;;  %v817_v31 = vcombine.low %v803_v24, %v769_v17 }
 0x17c   : > { %892 = vrot.lane.b32.xlu0 %v842_v3, %s2036_s20  ;;  %966 = vrot.lane.b32.xlu1 %v945_v7, %s2035_s19  ;;  %v1869_v25 = vpop.f32.mrf.mxu0  ;;  %v862_v34 = vrot.slane %v860_v35, 1  ;;  %v953_v50 = vrot.slane %v867_v44, 2  ;;  %v869_v54 = vrot.slane %v867_v44, 1 }
 0x17d   : > { %v951_v32 = vor.u32 %v950_v23, %v949_v22  ;;  %v2324_v40 = vpack.c.bf16 %v804_v30, %v817_v31  ;;  %v807_v51 = vcombine.high %v1869_v25, %v1869_v25  ;;  %v819_v52 = vcombine.low %v806_v45, %v1869_v25 }
 0x17e   : > { %v772_v37 = vpop.f32.mrf.mxu0  ;;  %v863_v43 = vor.u32 %v862_v34, %v858_v16  ;;  %v954_v55 = vor.u32 %v953_v50, %v952_v49  ;;  %v870_v61 = vor.u32 %v869_v54, %v865_v39 }
 0x17f   : > { %v805_v46 = vcombine.high %v772_v37, %v772_v37  ;;  %v921_v48 = vrot.slane %v2324_v40, 1  ;;  %v985_v56 = vrot.slane %v2324_v40, 2  ;;  %v872_v57 = vshrl.u32 %v2324_v40, 16 }
 0x180   : > { %894 = vrot.lane.b32.xlu1 %v849_v36, %s2036_s20  ;;  %928 = vrot.lane.b32.xlu0 %v918_v11, %s2033_s9  ;;  %v874_v58 = vshll.u32 %v2324_v40, 16  ;;  %v2335_v59 = vpack.c.bf16 %v807_v51, %v819_v52 }
 0x181   : > { %v818_v53 = vcombine.low %v772_v37, %v805_v46  ;;  %v955_v63 = vrot.slane %v872_v57, 1 }
 0x182   : > { %v923_v62 = vrot.slane %v2335_v59, 1  ;;  %v956_v0 = vrot.slane %v874_v58, 2  ;;  %v876_v29 = vrot.slane %v874_v58, 1  ;;  %v886_v7 = vshrl.u32 %v2335_v59, 16 }
 0x183   : > { %v2337_v60 = vpack.c.bf16 %v1868_v13, %v818_v53  ;;  %v888_v13 = vshll.u32 %v2335_v59, 16  ;;  %v987_v23 = vrot.slane %v2335_v59, 2 }
 0x184   : > { %992 = vrot.lane.b32.xlu0 %v982_v14, %s2034_s14  ;;  %930 = vrot.lane.b32.xlu1 %v919_v15, %s2033_s9  ;;  %v957_v8 = vor.u32 %v956_v0, %v955_v63  ;;  %v961_v14 = vrot.slane %v886_v7, 1  ;;  %v877_v15 = vor.u32 %v876_v29, %v872_v57 }
 0x185   : > { %v879_v3 = vshrl.u32 %v2337_v60, 16  ;;  %v881_v6 = vshll.u32 %v2337_v60, 16  ;;  %v922_v9 = vrot.slane %v2337_v60, 1  ;;  %v962_v35 = vrot.slane %v888_v13, 2 }
 0x186   : > { %v986_v22 = vrot.slane %v2337_v60, 2 }
 0x187   : > { %v958_v36 = vrot.slane %v879_v3, 1  ;;  %v959_v11 = vrot.slane %v881_v6, 2  ;;  %v883_v17 = vrot.slane %v881_v6, 1  ;;  %v963_v18 = vor.u32 %v962_v35, %v961_v14 }
 0x188   : > { %932 = vrot.lane.b32.xlu0 %v920_v20, %s2033_s9  ;;  %994 = vrot.lane.b32.xlu1 %v983_v21, %s2034_s14  ;;  %v890_v20 = vrot.slane %v888_v13, 1 }
 0x189   : > { %v960_v16 = vor.u32 %v959_v11, %v958_v36  ;;  %v884_v19 = vor.u32 %v883_v17, %v879_v3 }
 0x18a   : > { %v891_v21 = vor.u32 %v890_v20, %v886_v7 }
 0x18c   : > { %996 = vrot.lane.b32.xlu0 %v984_v26, %s2034_s14  ;;  %970 = vrot.lane.b32.xlu1 %v951_v32, %s2035_s19 }
 0x190   : > { %968 = vrot.lane.b32.xlu0 %v948_v41, %s2035_s19  ;;  %898 = vrot.lane.b32.xlu1 %v863_v43, %s2036_s20 }
 0x194   : > { %896 = vrot.lane.b32.xlu0 %v856_v47, %s2036_s20  ;;  %934 = vrot.lane.b32.xlu1 %v921_v48, %s2033_s9 }
 0x198   : > { %972 = vrot.lane.b32.xlu0 %v954_v55, %s2035_s19  ;;  %998 = vrot.lane.b32.xlu1 %v985_v56, %s2034_s14 }
 0x19c   : > { %900 = vrot.lane.b32.xlu0 %v870_v61, %s2036_s20  ;;  %938 = vrot.lane.b32.xlu1 %v923_v62, %s2033_s9 }
 0x1a0   : > { %974 = vrot.lane.b32.xlu1 %v957_v8, %s2035_s19  ;;  %936 = vrot.lane.b32.xlu0 %v922_v9, %s2033_s9 }
 0x1a4   : > { %902 = vrot.lane.b32.xlu1 %v877_v15, %s2036_s20  ;;  %976 = vrot.lane.b32.xlu0 %v960_v16, %s2035_s19 }
 0x1a8   : > { %978 = vrot.lane.b32.xlu1 %v963_v18, %s2035_s19  ;;  %904 = vrot.lane.b32.xlu0 %v884_v19, %s2036_s20 }
 0x1ac   : > { %906 = vrot.lane.b32.xlu1 %v891_v21, %s2036_s20  ;;  %1000 = vrot.lane.b32.xlu0 %v986_v22, %s2034_s14  ;;  %s1628_s20 = scalar_lea.sflag [#allocation3], %s240_s12 }
 0x1b0   : > { %1002 = vrot.lane.b32.xlu1 %v987_v23, %s2034_s14  ;;  %s1785_s14 = sshll.u32 %s2095_s25, 7  ;;  %s1975_s25 = scalar_lea.vmem %s1974_s29, 256 }
 0x1b1   : > { %s1639_s19 = scalar_lea.hbm %s2534_s6, %s1785_s14  ;;  %p1977_p1 = scmp.lt.s32.totalorder %s1975_s25, %s1969_s26 }
 0x1b3   : > { %p1978_p2 = por %p1977_p1, %p1976_p0 }
 0x1b5   : > { %p1979_p3 = pnand %p1978_p2, %p1972_p13 }
 0x1e2   : > { %v925_v24 = vpop.permute.xlu0 %924 }
 0x1e6   : > { %v927_v25 = vpop.permute.xlu1 %926  ;;  %v989_v26 = vpop.permute.xlu0 %988 }
 0x1ea   : > { %v991_v27 = vpop.permute.xlu1 %990  ;;  %v965_v28 = vpop.permute.xlu0 %964 }
 0x1eb   : > { %v1040_v30 = vsel %vm1038_vm1, %v925_v24, %v965_v28 }
 0x1ec   : > { %v1057_v37 = vsel %vm1055_vm2, %v1040_v30, %v989_v26 }
 0x1ee   : > { %v967_v31 = vpop.permute.xlu1 %966  ;;  %v893_v32 = vpop.permute.xlu0 %892 }
 0x1ef   : > { %v1042_v34 = vsel %vm1038_vm1, %v927_v25, %v967_v31  ;;  %v1006_v39 = vsel %vm1004_vm3, %v2268_v33, %v893_v32 }
 0x1f0   : > { %v1059_v38 = vsel %vm1055_vm2, %v1042_v34, %v991_v27  ;;  %v1023_v46 = vsel %vm1021_vm5, %v1006_v39, %v925_v24 }
 0x1f1   : > { %v1739_v41 = vcombine.low %v1057_v37, %v1059_v38 }
 0x1f2   : > { %v895_v43 = vpop.permute.xlu1 %894  ;;  %v929_v44 = vpop.permute.xlu0 %928 }
 0x1f3   : > { %v1008_v45 = vsel %vm1004_vm3, %v2273_v42, %v895_v43  ;;  %1762 = vmatprep.mubr.msk.bf16.mxu1 %vm1243_vm4, %v1739_v41  ;;  %v1946_v43 = vld [vmem:[%s2532_s4 + $0x64] ss:$8 sps:$4 sm:$0xff]  }
 0x1f4   : > { %v1025_v47 = vsel %vm1021_vm5, %v1008_v45, %v927_v25  ;;  %v1949_v45 = vld [vmem:[%s2532_s4 + $0x54] ss:$8 sps:$4 sm:$0xff]  }
 0x1f5   : > { %v1738_v48 = vcombine.low %v1023_v46, %v1025_v47  ;;  %v1947_v46 = vld [vmem:[%s2532_s4 + $0x50] ss:$8 sps:$4 sm:$0xff]   ;;  %v1952_v47 = vld [vmem:[%s2532_s4 + $0x44] ss:$8 sps:$4 sm:$0xff]  }
 0x1f6   : > { %v931_v49 = vpop.permute.xlu1 %930  ;;  %v993_v50 = vpop.permute.xlu0 %992 }
 0x1f7   : > { %1293 = vmatmul.mubr.bf16.vlgmr.msra.gmra.mxu1 %v1738_v48  ;;  %v1950_v48 = vld [vmem:[%s2532_s4 + $0x40] ss:$8 sps:$4 sm:$0xff]  }
 0x1fa   : > { %v995_v51 = vpop.permute.xlu1 %994  ;;  %v933_v52 = vpop.permute.xlu0 %932 }
 0x1fe   : > { %v971_v53 = vpop.permute.xlu1 %970  ;;  %v997_v33 = vpop.permute.xlu0 %996 }
 0x1ff   : > { %v1046_v54 = vsel %vm1038_vm1, %v931_v49, %v971_v53  ;;  %v1961_v53 = vld [vmem:[%s2532_s4 + $0x14] ss:$8 sps:$4 sm:$0xff]  }
 0x200   : > { %v1063_v57 = vsel %vm1055_vm2, %v1046_v54, %v995_v51  ;;  %v1958_v51 = vld [vmem:[%s2532_s4 + $0x24] ss:$8 sps:$4 sm:$0xff]  }
 0x201   : > { %v1964_v54 = vld [vmem:[%s2532_s4 + $0x4] ss:$8 sps:$4 sm:$0xff]  }
 0x202   : > { %v899_v55 = vpop.permute.xlu1 %898  ;;  %v969_v56 = vpop.permute.xlu0 %968 }
 0x203   : > { %v1044_v42 = vsel %vm1038_vm1, %v929_v44, %v969_v56  ;;  %v1012_v61 = vsel %vm1004_vm3, %v2301_v10, %v899_v55  ;;  %v1962_v55 = vld [vmem:[%s2532_s4] ss:$8 sps:$4 sm:$0xff]   ;;  %v2037_v56 = vmov 0  }
 0x204   : > { %v1061_v58 = vsel %vm1055_vm2, %v1044_v42, %v993_v50  ;;  %v1029_v6 = vsel %vm1021_vm5, %v1012_v61, %v931_v49  ;;  %v1955_v49 = vld [vmem:[%s2532_s4 + $0x34] ss:$8 sps:$4 sm:$0xff]   ;;  %v1953_v50 = vld [vmem:[%s2532_s4 + $0x30] ss:$8 sps:$4 sm:$0xff]   ;;  %1583 = vmatprep.mubr.bf16.mxu0 %v2037_v56 }
 0x205   : > { %v1741_v62 = vcombine.low %v1061_v58, %v1063_v57 }
 0x206   : > { %v935_v63 = vpop.permute.xlu1 %934  ;;  %v897_v0 = vpop.permute.xlu0 %896 }
 0x207   : > { %v1010_v3 = vsel %vm1004_vm3, %v2297_v1, %v897_v0  ;;  %1763 = vmatprep.mubr.msk.bf16.mxu1 %vm1243_vm4, %v1741_v62 }
 0x208   : > { %v1027_v29 = vsel %vm1021_vm5, %v1010_v3, %v929_v44  ;;  %v1944_v44 = vld [vmem:[%s2532_s4 + $0x60] ss:$8 sps:$4 sm:$0xff]  }
 0x209   : > { %v1740_v7 = vcombine.low %v1027_v29, %v1029_v6 }
 0x20a   : > { %v999_v8 = vpop.permute.xlu1 %998  ;;  %v973_v9 = vpop.permute.xlu0 %972 }
 0x20b   : > { %1301 = vmatmul.mubr.bf16.gmra.mxu1 %v1740_v7  ;;  %v1048_v10 = vsel %vm1038_vm1, %v933_v52, %v973_v9 }
 0x20c   : > { %v1065_v1 = vsel %vm1055_vm2, %v1048_v10, %v997_v33  ;;  %v1959_v33 = vld [vmem:[%s2532_s4 + $0x10] ss:$8 sps:$4 sm:$0xff]  }
 0x20e   : > { %v939_v36 = vpop.permute.xlu1 %938  ;;  %v901_v11 = vpop.permute.xlu0 %900 }
 0x20f   : > { %v1014_v35 = vsel %vm1004_vm3, %v2306_v12, %v901_v11 }
 0x210   : > { %v1031_v21 = vsel %vm1021_vm5, %v1014_v35, %v933_v52  ;;  %v1956_v52 = vld [vmem:[%s2532_s4 + $0x20] ss:$8 sps:$4 sm:$0xff]  }
 0x212   : > { %v975_v13 = vpop.permute.xlu1 %974  ;;  %v937_v14 = vpop.permute.xlu0 %936 }
 0x213   : > { %v1050_v15 = vsel %vm1038_vm1, %v935_v63, %v975_v13 }
 0x214   : > { %v1067_v16 = vsel %vm1055_vm2, %v1050_v15, %v999_v8 }
 0x215   : > { %v1743_v17 = vcombine.low %v1065_v1, %v1067_v16 }
 0x216   : > { %v903_v18 = vpop.permute.xlu1 %902  ;;  %v977_v19 = vpop.permute.xlu0 %976 }
 0x217   : > { %v1016_v20 = vsel %vm1004_vm3, %v2324_v40, %v903_v18  ;;  %1764 = vmatprep.mubr.msk.bf16.mxu1 %vm1243_vm4, %v1743_v17  ;;  %v1052_v40 = vsel %vm1038_vm1, %v937_v14, %v977_v19 }
 0x218   : > { %v1033_v22 = vsel %vm1021_vm5, %v1016_v20, %v935_v63 }
 0x219   : > { %v1742_v23 = vcombine.low %v1031_v21, %v1033_v22 }
 0x21a   : > { %v979_v24 = vpop.permute.xlu1 %978  ;;  %v905_v25 = vpop.permute.xlu0 %904 }
 0x21b   : > { %1309 = vmatmul.mubr.bf16.gmra.mxu1 %v1742_v23  ;;  %v1018_v28 = vsel %vm1004_vm3, %v2337_v60, %v905_v25  ;;  %v1054_v30 = vsel %vm1038_vm1, %v939_v36, %v979_v24  ;;  %v1941_v60 = vld [vmem:[%s2532_s4 + $0x70] ss:$8 sps:$4 sm:$0xff]  }
 0x21c   : > { %v1035_v38 = vsel %vm1021_vm5, %v1018_v28, %v937_v14  ;;  %v2455_v14 = vld [vmem:[%s2531_s3] ss:$0 sm:$0xff] }
 0x21e   : > { %v907_v26 = vpop.permute.xlu1 %906  ;;  %v1001_v27 = vpop.permute.xlu0 %1000 }
 0x21f   : > { %v1020_v12 = vsel %vm1004_vm3, %v2335_v59, %v907_v26  ;;  %v1069_v34 = vsel %vm1055_vm2, %v1052_v40, %v1001_v27  ;;  %v1943_v59 = vld [vmem:[%s2532_s4 + $0x74] ss:$8 sps:$4 sm:$0xff]  }
 0x220   : > { %v1037_v31 = vsel %vm1021_vm5, %v1020_v12, %v939_v36  ;;  %1551 = vmatprep.subr.bf16.mxu0 %v1943_v59 }
 0x221   : > { %v1744_v41 = vcombine.low %v1035_v38, %v1037_v31  ;;  %1552 = vmatpush1.bf16.msra.mxu0 %v1941_v60 }
 0x222   : > { %v1003_v32 = vpop.permute.xlu1 %1002  ;;  %1553 = vmatprep.subr.bf16.mxu0 %v1946_v43 }
 0x223   : > { %v1071_v37 = vsel %vm1055_vm2, %v1054_v30, %v1003_v32 }
 0x224   : > { %v1745_v39 = vcombine.low %v1069_v34, %v1071_v37 }
 0x225   : > { %1554 = vmatpush1.bf16.msra.mxu0 %v1944_v44 }
 0x226   : > { %1765 = vmatprep.mubr.msk.bf16.mxu1 %vm1243_vm4, %v1745_v39  ;;  %1555 = vmatprep.subr.bf16.mxu0 %v1949_v45 }
 0x227   : > { %1317 = vmatmul.mubr.bf16.gmra.mxu1 %v1744_v41 }
 0x229   : > { %1556 = vmatpush1.bf16.msra.mxu0 %v1947_v46 }
 0x22a   : > { %1557 = vmatprep.subr.bf16.mxu0 %v1952_v47 }
 0x22d   : > { %1558 = vmatpush1.bf16.msra.mxu0 %v1950_v48 }
 0x22e   : > { %1559 = vmatprep.subr.bf16.mxu0 %v1955_v49 }
 0x231   : > { %1560 = vmatpush1.bf16.msra.mxu0 %v1953_v50 }
 0x232   : > { %1561 = vmatprep.subr.bf16.mxu0 %v1958_v51 }
 0x235   : > { %1562 = vmatpush1.bf16.msra.mxu0 %v1956_v52 }
 0x236   : > { %1563 = vmatprep.subr.bf16.mxu0 %v1961_v53 }
 0x239   : > { %1564 = vmatpush1.bf16.msra.mxu0 %v1959_v33 }
 0x23a   : > { %1565 = vmatprep.subr.bf16.mxu0 %v1964_v54 }
 0x23d   : > { %1566 = vmatpush1.bf16.msra.mxu0 %v1962_v55 }
 0x2b7   : > { %v1818_v42 = vpop.f32.mrf.mxu1 }
 0x2b9   : > { %v1819_v57 = vpop.f32.mrf.mxu1 }
 0x2ba   : > { %v1820_v58 = vadd.f32 %v1819_v57, %v1818_v42 }
 0x2bb   : > { %v1821_v61 = vpop.f32.mrf.mxu1 }
 0x2bc   : > { %v1325_v62 = vrot.slane %v1820_v58, 4 }
 0x2bd   : > { %v1822_v63 = vpop.f32.mrf.mxu1 }
 0x2be   : > { %v1326_v0 = vmax.f32 %v1820_v58, %v1325_v62  ;;  %v1823_v3 = vadd.f32 %v1822_v63, %v1821_v61 }
 0x2c0   : > { %v1327_v6 = vrot.slane %v1326_v0, 2  ;;  %v1331_v29 = vrot.slane %v1823_v3, 4 }
 0x2c2   : > { %v1328_v7 = vmax.f32 %v1326_v0, %v1327_v6  ;;  %v1332_v8 = vmax.f32 %v1823_v3, %v1331_v29 }
 0x2c4   : > { %v1329_v9 = vrot.slane %v1328_v7, 1  ;;  %v1333_v36 = vrot.slane %v1332_v8, 2 }
 0x2c6   : > { %v1334_v11 = vmax.f32 %v1332_v8, %v1333_v36  ;;  %v1330_v10 = vmax.f32 %v1328_v7, %v1329_v9 }
 0x2c8   : > { %v1335_v13 = vrot.slane %v1334_v11, 1  ;;  %v1380_v16 = vadd.f32 %v2455_v14, %v1330_v10 }
 0x2ca   : > { %v1336_v15 = vmax.f32 %v1334_v11, %v1335_v13  ;;  %v2461_v21 = vmax.f32 %v1380_v16, 0.0 }
 0x2cb   : > { %v1824_v1 = vpop.f32.mrf.mxu1 }
 0x2cc   : > { %v1381_v35 = vadd.f32 %v2455_v14, %v1336_v15 }
 0x2cd   : > { %v1825_v17 = vpop.f32.mrf.mxu1 }
 0x2ce   : > { %v2459_v18 = vmax.f32 %v1381_v35, 0.0  ;;  %v1826_v19 = vadd.f32 %v1825_v17, %v1824_v1 }
 0x2cf   : > { %v1827_v20 = vpop.f32.mrf.mxu1 }
 0x2d0   : > { %v1609_v22 = vrot.slane %v2459_v18, 7  ;;  %v1337_v23 = vrot.slane %v1826_v19, 4 }
 0x2d1   : > { %v1828_v24 = vpop.f32.mrf.mxu1 }
 0x2d2   : > { %v1610_v25 = vsel %vm1449_vm6, %v1609_v22, %v2461_v21  ;;  %v1338_v26 = vmax.f32 %v1826_v19, %v1337_v23  ;;  %v1829_v12 = vadd.f32 %v1828_v24, %v1827_v20  ;;  %v1397_v23 = vpack.c.bf16 %v2459_v18, %v2459_v18 }
 0x2d3   : > { %v1396_v18 = vpack.c.bf16 %v2461_v21, %v2461_v21 }
 0x2d4   : > { %v1339_v27 = vrot.slane %v1338_v26, 2  ;;  %v1343_v28 = vrot.slane %v1829_v12, 4 }
 0x2d6   : > { %v1340_v40 = vmax.f32 %v1338_v26, %v1339_v27  ;;  %v1344_v30 = vmax.f32 %v1829_v12, %v1343_v28 }
 0x2d8   : > { %v1341_v31 = vrot.slane %v1340_v40, 1  ;;  %v1345_v32 = vrot.slane %v1344_v30, 2 }
 0x2da   : > { %v1342_v34 = vmax.f32 %v1340_v40, %v1341_v31  ;;  %v1346_v37 = vmax.f32 %v1344_v30, %v1345_v32  ;;  %v1441_v31 = vunpack.c.l.b16 %v1397_v23 }
 0x2db   : > { %v1830_v38 = vpop.f32.mrf.mxu1 }
 0x2dc   : > { %v1382_v39 = vadd.f32 %v2455_v14, %v1342_v34  ;;  %v1347_v41 = vrot.slane %v1346_v37, 1 }
 0x2dd   : > { %v1831_v59 = vpop.f32.mrf.mxu1 }
 0x2de   : > { %v1390_v60 = vmax.f32 %v1382_v39, 0.0  ;;  %v1348_v43 = vmax.f32 %v1346_v37, %v1347_v41  ;;  %v1832_v44 = vadd.f32 %v1831_v59, %v1830_v38 }
 0x2df   : > { %v1833_v45 = vpop.f32.mrf.mxu1 }
 0x2e0   : > { %v1611_v46 = vrot.slane %v1390_v60, 6  ;;  %v1383_v47 = vadd.f32 %v2455_v14, %v1348_v43  ;;  %v1349_v48 = vrot.slane %v1832_v44, 4  ;;  %v1398_v12 = vpack.c.bf16 %v1390_v60, %v1390_v60 }
 0x2e1   : > { %v1834_v49 = vpop.f32.mrf.mxu1  ;;  %v1448_v60 = vrot.slane %v1441_v31, 7 }
 0x2e2   : > { %v1612_v50 = vsel %vm1452_vm7, %v1611_v46, %v1610_v25  ;;  %v1391_v51 = vmax.f32 %v1383_v47, 0.0  ;;  %v1350_v52 = vmax.f32 %v1832_v44, %v1349_v48  ;;  %v1835_v53 = vadd.f32 %v1834_v49, %v1833_v45 }
 0x2e3   : > { %v1442_v41 = vunpack.c.l.b16 %v1398_v12 }
 0x2e4   : > { %v1613_v33 = vrot.slane %v1391_v51, 5  ;;  %v1351_v54 = vrot.slane %v1350_v52, 2  ;;  %v1355_v55 = vrot.slane %v1835_v53, 4  ;;  %v1399_v28 = vpack.c.bf16 %v1391_v51, %v1391_v51 }
 0x2e5   : > { %v1451_v51 = vrot.slane %v1442_v41, 6 }
 0x2e6   : > { %v1614_v56 = vsel %vm1455_vm8, %v1613_v33, %v1612_v50  ;;  %v1352_v42 = vmax.f32 %v1350_v52, %v1351_v54  ;;  %v1356_v57 = vmax.f32 %v1835_v53, %v1355_v55  ;;  %v1443_v59 = vunpack.c.l.b16 %v1399_v28 }
 0x2e7   : > { %v1836_v58 = vpop.f32.mrf.mxu1  ;;  %v1440_v50 = vunpack.c.l.b16 %v1396_v18 }
 0x2e8   : > { %v1353_v61 = vrot.slane %v1352_v42, 1  ;;  %v1357_v62 = vrot.slane %v1356_v57, 2  ;;  %v1454_v52 = vrot.slane %v1443_v59, 5 }
 0x2e9   : > { %v1837_v63 = vpop.f32.mrf.mxu1  ;;  %v1450_v55 = vsel %vm1449_vm6, %v1448_v60, %v1440_v50 }
 0x2ea   : > { %v1354_v0 = vmax.f32 %v1352_v42, %v1353_v61  ;;  %v1838_v3 = vadd.f32 %v1837_v63, %v1836_v58  ;;  %v1358_v6 = vmax.f32 %v1356_v57, %v1357_v62  ;;  %v1453_v58 = vsel %vm1452_vm7, %v1451_v51, %v1450_v55 }
 0x2eb   : > { %v1839_v29 = vpop.f32.mrf.mxu1  ;;  %v1456_v62 = vsel %vm1455_vm8, %v1454_v52, %v1453_v58 }
 0x2ec   : > { %v1384_v7 = vadd.f32 %v2455_v14, %v1354_v0  ;;  %v1361_v8 = vrot.slane %v1838_v3, 4  ;;  %v1359_v9 = vrot.slane %v1358_v6, 1 }
 0x2ed   : > { %v1840_v36 = vpop.f32.mrf.mxu1 }
 0x2ee   : > { %v1392_v11 = vmax.f32 %v1384_v7, 0.0  ;;  %v1362_v10 = vmax.f32 %v1838_v3, %v1361_v8  ;;  %v1841_v13 = vadd.f32 %v1840_v36, %v1839_v29  ;;  %v1360_v15 = vmax.f32 %v1358_v6, %v1359_v9  ;;  %v1420_v9 = vld [vmem:[%s2533_s5] sm:$0x3] }
 0x2ef   : > { %v1429_v36 = vrot.slane %v1420_v9, %v264_v4 }
 0x2f0   : > { %v1615_v1 = vrot.slane %v1392_v11, 4  ;;  %v1363_v16 = vrot.slane %v1362_v10, 2  ;;  %v1367_v35 = vrot.slane %v1841_v13, 4  ;;  %v1385_v17 = vadd.f32 %v2455_v14, %v1360_v15 }
 0x2f1   : > { %v1400_v32 = vpack.c.bf16 %v1392_v11, %v1392_v11 }
 0x2f2   : > { %v1364_v19 = vmax.f32 %v1362_v10, %v1363_v16  ;;  %v1368_v20 = vmax.f32 %v1841_v13, %v1367_v35  ;;  %v1616_v22 = vsel %vm1458_vm9, %v1615_v1, %v1614_v56  ;;  %v1393_v24 = vmax.f32 %v1385_v17, 0.0 }
 0x2f3   : > { %v1444_v45 = vunpack.c.l.b16 %v1400_v32 }
 0x2f4   : > { %v1365_v25 = vrot.slane %v1364_v19, 1  ;;  %v1369_v26 = vrot.slane %v1368_v20, 2  ;;  %v1617_v27 = vrot.slane %v1393_v24, 3  ;;  %v1401_v37 = vpack.c.bf16 %v1393_v24, %v1393_v24 }
 0x2f5   : > { %v1457_v21 = vrot.slane %v1444_v45, 4 }
 0x2f6   : > { %v1366_v40 = vmax.f32 %v1364_v19, %v1365_v25  ;;  %v1370_v30 = vmax.f32 %v1368_v20, %v1369_v26  ;;  %v1618_v34 = vsel %vm1461_vm10, %v1617_v27, %v1616_v22  ;;  %v1445_v46 = vunpack.c.l.b16 %v1401_v37 }
 0x2f7   : > { %v1459_v0 = vsel %vm1458_vm9, %v1457_v21, %v1456_v62  ;;  %v1425_v19 = vrot.slane %v1420_v9, %v253_v5 }
 0x2f8   : > { %v1386_v38 = vadd.f32 %v2455_v14, %v1366_v40  ;;  %v1371_v39 = vrot.slane %v1370_v30, 1  ;;  %v1460_v56 = vrot.slane %v1445_v46, 3 }
 0x2fa   : > { %v1394_v43 = vmax.f32 %v1386_v38, 0.0  ;;  %v1372_v44 = vmax.f32 %v1370_v30, %v1371_v39  ;;  %v1462_v3 = vsel %vm1461_vm10, %v1460_v56, %v1459_v0 }
 0x2fc   : > { %v1402_v47 = vpack.c.bf16 %v1394_v43, %v1394_v43  ;;  %v1619_v48 = vrot.slane %v1394_v43, 2  ;;  %v1387_v49 = vadd.f32 %v2455_v14, %v1372_v44 }
 0x2fe   : > { %v1446_v53 = vunpack.c.l.b16 %v1402_v47  ;;  %v1395_v33 = vmax.f32 %v1387_v49, 0.0  ;;  %v1620_v54 = vsel %vm1464_vm11, %v1619_v48, %v1618_v34 }
 0x300   : > { %v1403_v42 = vpack.c.bf16 %v1395_v33, %v1395_v33  ;;  %v1621_v57 = vrot.slane %v1395_v33, 1  ;;  %v1463_v61 = vrot.slane %v1446_v53, 2 }
 0x302   : > { %v1447_v14 = vunpack.c.l.b16 %v1403_v42  ;;  %v1622_v63 = vsel %vm1467_vm12, %v1621_v57, %v1620_v54  ;;  %v1465_v29 = vsel %vm1464_vm11, %v1463_v61, %v1462_v3 }
 0x304   : > { %v1466_v6 = vrot.slane %v1447_v14, 1 }
 0x306   : > { %v1468_v7 = vsel %vm1467_vm12, %v1466_v6, %v1465_v29 }
 0x307   : > { %v1469_v8 = vpack.c.b16 %v1468_v7, %v1468_v7 }
 0x309   : > { %1584 = vmatmul.mubr.bf16.vlgmr.msra.gmra.mxu0 %v1469_v8 }
 0x3c9   : > { %v1585_v11 = vpop.f32.mrf.mxu0 }
 0x3ca   : > { %v1586_v20 = vadd.f32 %v1585_v11, %v1425_v19 }
 0x3cb   : > { %v1587_v10 = vpop.f32.mrf.mxu0 }
 0x3cc   : > { %v1588_v13 = vadd.f32 %v1587_v10, %v1429_v36  ;;  %v1592_v4 = vmax.f32 %v1586_v20, 0.0 }
 0x3cd   : > { %v1589_v15 = vpop.f32.mrf.mxu0 }
 0x3ce   : > { %v1783_v1 = vmul.f32 -1.442695, %v1588_v13 }
 0x3cf   : > { %v1590_v16 = vpop.f32.mrf.mxu0 }
 0x3d0   : > { %1965 = vpow2.f32 %v1783_v1 }
 0x3dd   : > { %v1966_v35 = vpop.eup %1965 }
 0x3de   : > { %v1596_v17 = vadd.f32 1.0, %v1966_v35 }
 0x3e0   : > { %1967 = vrcp.f32 %v1596_v17 }
 0x3ed   : > { %v1968_v22 = vpop.eup %1967 }
 0x3ee   : > { %v1600_v23 = vsub.f32 1.0, %v1968_v22  ;;  %v1599_v24 = vmul.f32 %v1968_v22, %v1592_v4 }
 0x3f0   : > { %v1624_v25 = vmul.f32 %v1622_v63, %v1600_v23 }
 0x3f2   : > { %v1625_v26 = vadd.f32 %v1624_v25, %v1599_v24 }
 0x3f4   : > { %1626 = vst [vmem:[%s242_s15] sm:$0xff] %v1625_v26 }
 0x3f5   : > { %1982 = shalt.err (!%p1979_p3)
}
 0x3f6   : > { %s1983_s9 = scalar_lea.hbm %s1639_s19, 128  ;;  %s1987_s12 = scalar_lea.hbm %s2534_s6, 256 }
 0x3f7   : > { %p1984_p4 = scmp.ne.s32.totalorder %s1639_s19, %s1983_s9  ;;  %p1988_p9 = scmp.lt.s32.totalorder %s1639_s19, %s2534_s6 }
 0x3f8   : > { %p1989_p10 = scmp.lt.s32.totalorder %s1987_s12, %s1983_s9 }
 0x3f9   : > { %p1985_p7 = pnand %p1984_p4, %p2112_p5 }
 0x3fa   : > { %p1990_p11 = por %p1989_p10, %p1988_p9 }
 0x3fb   : > { %p1986_p8 = pneg %p1985_p7 }
 0x3fd   : > { %p1991_p12 = pnand %p1990_p11, %p1986_p8 }
 0x3ff   : > { %1994 = shalt.err (!%p1991_p12)
}
 0x400   : > { %1871 = dma.vmem_to_hbm [thread:$0]  (%p2112_p5), %s1642_s16, 128, %s1639_s19, %s1628_s20  }
 0x401 PF: > { %p1877_p13 = scmp.ge.s32.totalorder %s2029_s24, 2  ;;  %s1653_s15 = sand.u32 1, %s2017_s21  }
 0x402   : > { %s1654_s17 = scalar_lea.sflag [#allocation3], %s1653_s15 }
 0x403   : > { %p1874_p0 = pnand %p1877_p13, %p2116_p6 }
 0x405   : > { %p1875_p1 = pneg %p1874_p0 }
 0x407   : > { %2012 = dma.done.wait (%p1875_p1), %s1654_s17, 128  }
 0x408   : > { %2014 = vsyncadd (%p1875_p1), %s1654_s17, 4294967168  ;;  %p16_p2 = scmp.ge.s32.totalorder %s2099_s27, 4   ;;  %s2537_s21 = smov %s2021_s22 }
 0x409   : > { %s2538_s22 = smov %s2025_s23  ;;  %s2539_s23 = smov %s2110_s30 }
 0x40a   : > { %s2540_s24 = smov %s2099_s27  ;;  %18 = sbr.rel (!%p16_p2) target bundleno = 3 (0x3), region = 79 }
 0x40f   :  { %1659 = vsyncpa [#allocation3], 1 }
 0x410   :  { %1661 = vsyncpa [#allocation3 + $0x1], 1 }

</bundles_post_ra>
